<compile_context>
chip_gen: v5e
topology: v5e:2x2
jax: 0.10.0
libtpu: 0.0.40
codegen_flags: <defaults>
</compile_context>

<pallas_src>
import jax
import jax.numpy as jnp
from jax.experimental import pallas as pl
from jax.experimental.pallas import tpu as pltpu

_LANE = 128
_SUB = 8


def _outconv_kernel(w_ref, b_ref, x_ref, o_ref):
    # w_ref: (C_out, C_in) f32 in SMEM, b_ref: (C_out,) f32 in SMEM
    # x_ref: (1, C_in, R, 128) in VMEM, o_ref: (1, C_out, R, 128) in VMEM
    c_out, c_in = w_ref.shape
    for co in range(c_out):                               # unrolled at trace time
        # Fold bias into the first FMA; all operands are dense (R, 128) tiles.
        acc = w_ref[co, 0] * x_ref[0, 0] + b_ref[co]
        for ci in range(1, c_in):
            acc = acc + w_ref[co, ci] * x_ref[0, ci]      # VPU scalar-broadcast FMA
        o_ref[0, co] = acc.astype(o_ref.dtype)


def _vmem_capacity_bytes():
    try:
        return int(pltpu.get_tpu_info().vmem_capacity_bytes)
    except Exception:
        return 128 * 1024 * 1024


def _choose_row_block(rows, n_batch, c_in, c_out, itemsize, max_block_bytes):
    """Rows per block: multiple of 8, fits the VMEM budget, >=4 grid steps if possible."""
    if rows <= _SUB:
        return rows                                       # tiny input: one full block per batch
    per_row = (c_in + c_out) * _LANE * itemsize           # true (in + out) bytes per row
    r_cap = max(_SUB, (max_block_bytes // per_row) // _SUB * _SUB)
    rows_up = -(-rows // _SUB) * _SUB
    r = min(r_cap, rows_up)
    min_steps = 4                                          # pipelining + dual-TC sharding (v7x)
    while n_batch * (-(-rows // r)) < min_steps and r > _SUB:
        r = max(_SUB, (r // 2 + _SUB - 1) // _SUB * _SUB)
    return r


def out_conv(x_nchw, weight, bias):
    """1x1 conv (OutConv.forward).

    Args:
      x_nchw: (N, C_in, H, W) input.
      weight: (C_out, C_in, 1, 1) conv weight (PyTorch layout).
      bias:   (C_out,) conv bias.
    Returns:
      (N, C_out, H, W) output.
    """
    N, C_in, H, W = x_nchw.shape
    C_out = weight.shape[0]
    HW = H * W
    itemsize = jnp.dtype(x_nchw.dtype).itemsize

    vmem_cap = _vmem_capacity_bytes()
    # (in + out) bytes of one grid step; the pipeline double-buffers this, so
    # keep 2x comfortably under the scoped limit on every generation
    # (v7x: 64 MiB per TC, v5e/v6e: 128 MiB).
    max_block_bytes = min(12 * 1024 * 1024, vmem_cap // 8)

    rows_raw = -(-HW // _LANE)                            # cdiv(HW, 128)
    R = _choose_row_block(rows_raw, N, C_in, C_out, itemsize, max_block_bytes)
    chunks = -(-rows_raw // R)
    rows = chunks * R
    HW_pad = rows * _LANE

    # Zero-cost contiguous reshape; explicit pad only when HW isn't tile-aligned.
    x3 = x_nchw.reshape(N, C_in, HW)
    if HW_pad != HW:
        x3 = jnp.pad(x3, ((0, 0), (0, 0), (0, HW_pad - HW)))
    x4 = x3.reshape(N, C_in, rows, _LANE)

    w2d = weight.reshape(C_out, C_in).astype(jnp.float32)   # SMEM scalars
    b1d = bias.reshape(C_out).astype(jnp.float32)            # SMEM scalars

    block_bytes = (C_in + C_out) * R * _LANE * itemsize
    vmem_limit = int(min(max(32 * 1024 * 1024, 4 * block_bytes),
                         max(vmem_cap - 8 * 1024 * 1024, 32 * 1024 * 1024)))

    y4 = pl.pallas_call(
        _outconv_kernel,
        out_shape=jax.ShapeDtypeStruct((N, C_out, rows, _LANE), x_nchw.dtype),
        grid_spec=pltpu.PrefetchScalarGridSpec(
            num_scalar_prefetch=0,
            grid=(N, chunks),
            in_specs=[
                pl.BlockSpec(memory_space=pltpu.MemorySpace.SMEM),   # weights
                pl.BlockSpec(memory_space=pltpu.MemorySpace.SMEM),   # bias
                pl.BlockSpec((1, C_in, R, _LANE), lambda n, j: (n, 0, j, 0)),
            ],
            out_specs=pl.BlockSpec((1, C_out, R, _LANE), lambda n, j: (n, 0, j, 0)),
        ),
        compiler_params=pltpu.CompilerParams(
            dimension_semantics=("parallel", "parallel"),
            vmem_limit_bytes=vmem_limit,
        ),
    )(w2d, b1d, x4)

    y3 = y4.reshape(N, C_out, HW_pad)
    if HW_pad != HW:
        y3 = y3[:, :, :HW]
    return y3.reshape(N, C_out, H, W)


if __name__ == "__main__":
    # Small shapes consistent with OutConv(in_channels=4, out_channels=3)
    N, C_in, H, W = 2, 4, 16, 16
    C_out = 3

    key = jax.random.PRNGKey(0)
    kx, kw, kb = jax.random.split(key, 3)

    x = jax.random.normal(kx, (N, C_in, H, W), dtype=jnp.float32)
    weight = jax.random.normal(kw, (C_out, C_in, 1, 1), dtype=jnp.float32) * 0.1
    bias = jax.random.normal(kb, (C_out,), dtype=jnp.float32) * 0.1

    y = out_conv(x, weight, bias)
    y = jax.block_until_ready(y)

    # Reference check in plain JAX (1x1 conv == channel matmul)
    ref = jnp.einsum("nchw,oc->nohw", x, weight.reshape(C_out, C_in)) \
        + bias.reshape(1, C_out, 1, 1)
    assert y.shape == (N, C_out, H, W)
    assert jnp.allclose(y, ref, atol=1e-5, rtol=1e-5)

    print("KERNEL_OK")
</pallas_src>

<mosaic_0001>
module attributes {stable_mosaic.version = 11 : i64} {
  func.func @_outconv_kernel(%arg0: i32, %arg1: i32, %arg2: memref<3x4xf32, #tpu.memory_space<smem>>, %arg3: memref<3xf32, #tpu.memory_space<smem>>, %arg4: memref<1x4x2x128xf32, #tpu.memory_space<vmem>>, %arg5: memref<1x3x2x128xf32, #tpu.memory_space<vmem>>) attributes {dimension_semantics = [#tpu.dimension_semantics<parallel>, #tpu.dimension_semantics<parallel>], iteration_bounds = array<i64: 2, 1>, scalar_prefetch = 0 : i64, scratch_operands = 0 : i64, tpu.core_type = #tpu.core_type<tc>, window_params = [{transform_indices = @transform_0, window_bounds = array<i64: 3, 4>}, {transform_indices = @transform_1, window_bounds = array<i64: 3>}, {transform_indices = @transform_2, window_bounds = array<i64: 1, 4, 2, 128>}, {transform_indices = @transform_3, window_bounds = array<i64: 1, 3, 2, 128>}]} {
    %c0 = arith.constant 0 : index
    %c0_0 = arith.constant 0 : index
    %0 = memref.load %arg2[%c0, %c0_0] : memref<3x4xf32, #tpu.memory_space<smem>>
    %c0_1 = arith.constant 0 : index
    %c0_2 = arith.constant 0 : index
    %c0_3 = arith.constant 0 : index
    %c0_4 = arith.constant 0 : index
    %1 = vector.load %arg4[%c0_1, %c0_2, %c0_3, %c0_4] : memref<1x4x2x128xf32, #tpu.memory_space<vmem>>, vector<1x1x2x128xf32>
    %2 = vector.shape_cast %1 : vector<1x1x2x128xf32> to vector<2x128xf32>
    %3 = vector.broadcast %0 : f32 to vector<2x128xf32>
    %4 = arith.mulf %3, %2 : vector<2x128xf32>
    %c0_5 = arith.constant 0 : index
    %5 = memref.load %arg3[%c0_5] : memref<3xf32, #tpu.memory_space<smem>>
    %6 = vector.broadcast %5 : f32 to vector<2x128xf32>
    %7 = arith.addf %4, %6 : vector<2x128xf32>
    %c0_6 = arith.constant 0 : index
    %c1 = arith.constant 1 : index
    %8 = memref.load %arg2[%c0_6, %c1] : memref<3x4xf32, #tpu.memory_space<smem>>
    %c0_7 = arith.constant 0 : index
    %c1_8 = arith.constant 1 : index
    %c0_9 = arith.constant 0 : index
    %c0_10 = arith.constant 0 : index
    %9 = vector.load %arg4[%c0_7, %c1_8, %c0_9, %c0_10] : memref<1x4x2x128xf32, #tpu.memory_space<vmem>>, vector<1x1x2x128xf32>
    %10 = vector.shape_cast %9 : vector<1x1x2x128xf32> to vector<2x128xf32>
    %11 = vector.broadcast %8 : f32 to vector<2x128xf32>
    %12 = arith.mulf %11, %10 : vector<2x128xf32>
    %13 = arith.addf %7, %12 : vector<2x128xf32>
    %c0_11 = arith.constant 0 : index
    %c2 = arith.constant 2 : index
    %14 = memref.load %arg2[%c0_11, %c2] : memref<3x4xf32, #tpu.memory_space<smem>>
    %c0_12 = arith.constant 0 : index
    %c2_13 = arith.constant 2 : index
    %c0_14 = arith.constant 0 : index
    %c0_15 = arith.constant 0 : index
    %15 = vector.load %arg4[%c0_12, %c2_13, %c0_14, %c0_15] : memref<1x4x2x128xf32, #tpu.memory_space<vmem>>, vector<1x1x2x128xf32>
    %16 = vector.shape_cast %15 : vector<1x1x2x128xf32> to vector<2x128xf32>
    %17 = vector.broadcast %14 : f32 to vector<2x128xf32>
    %18 = arith.mulf %17, %16 : vector<2x128xf32>
    %19 = arith.addf %13, %18 : vector<2x128xf32>
    %c0_16 = arith.constant 0 : index
    %c3 = arith.constant 3 : index
    %20 = memref.load %arg2[%c0_16, %c3] : memref<3x4xf32, #tpu.memory_space<smem>>
    %c0_17 = arith.constant 0 : index
    %c3_18 = arith.constant 3 : index
    %c0_19 = arith.constant 0 : index
    %c0_20 = arith.constant 0 : index
    %21 = vector.load %arg4[%c0_17, %c3_18, %c0_19, %c0_20] : memref<1x4x2x128xf32, #tpu.memory_space<vmem>>, vector<1x1x2x128xf32>
    %22 = vector.shape_cast %21 : vector<1x1x2x128xf32> to vector<2x128xf32>
    %23 = vector.broadcast %20 : f32 to vector<2x128xf32>
    %24 = arith.mulf %23, %22 : vector<2x128xf32>
    %25 = arith.addf %19, %24 : vector<2x128xf32>
    %c0_21 = arith.constant 0 : index
    %c0_22 = arith.constant 0 : index
    %c0_23 = arith.constant 0 : index
    %c0_24 = arith.constant 0 : index
    %26 = vector.load %arg5[%c0_21, %c0_22, %c0_23, %c0_24] : memref<1x3x2x128xf32, #tpu.memory_space<vmem>>, vector<1x1x2x128xf32>
    %27 = vector.shape_cast %26 : vector<1x1x2x128xf32> to vector<2x128xf32>
    %28 = vector.shape_cast %25 : vector<2x128xf32> to vector<1x1x2x128xf32>
    tpu.vector_store %arg5[%c0_21, %c0_22, %c0_23, %c0_24], %28 {strides = array<i32>} : memref<1x3x2x128xf32, #tpu.memory_space<vmem>>, vector<1x1x2x128xf32>,
    %c1_25 = arith.constant 1 : index
    %c0_26 = arith.constant 0 : index
    %29 = memref.load %arg2[%c1_25, %c0_26] : memref<3x4xf32, #tpu.memory_space<smem>>
    %c0_27 = arith.constant 0 : index
    %c0_28 = arith.constant 0 : index
    %c0_29 = arith.constant 0 : index
    %c0_30 = arith.constant 0 : index
    %30 = vector.load %arg4[%c0_27, %c0_28, %c0_29, %c0_30] : memref<1x4x2x128xf32, #tpu.memory_space<vmem>>, vector<1x1x2x128xf32>
    %31 = vector.shape_cast %30 : vector<1x1x2x128xf32> to vector<2x128xf32>
    %32 = vector.broadcast %29 : f32 to vector<2x128xf32>
    %33 = arith.mulf %32, %31 : vector<2x128xf32>
    %c1_31 = arith.constant 1 : index
    %34 = memref.load %arg3[%c1_31] : memref<3xf32, #tpu.memory_space<smem>>
    %35 = vector.broadcast %34 : f32 to vector<2x128xf32>
    %36 = arith.addf %33, %35 : vector<2x128xf32>
    %c1_32 = arith.constant 1 : index
    %c1_33 = arith.constant 1 : index
    %37 = memref.load %arg2[%c1_32, %c1_33] : memref<3x4xf32, #tpu.memory_space<smem>>
    %c0_34 = arith.constant 0 : index
    %c1_35 = arith.constant 1 : index
    %c0_36 = arith.constant 0 : index
    %c0_37 = arith.constant 0 : index
    %38 = vector.load %arg4[%c0_34, %c1_35, %c0_36, %c0_37] : memref<1x4x2x128xf32, #tpu.memory_space<vmem>>, vector<1x1x2x128xf32>
    %39 = vector.shape_cast %38 : vector<1x1x2x128xf32> to vector<2x128xf32>
    %40 = vector.broadcast %37 : f32 to vector<2x128xf32>
    %41 = arith.mulf %40, %39 : vector<2x128xf32>
    %42 = arith.addf %36, %41 : vector<2x128xf32>
    %c1_38 = arith.constant 1 : index
    %c2_39 = arith.constant 2 : index
    %43 = memref.load %arg2[%c1_38, %c2_39] : memref<3x4xf32, #tpu.memory_space<smem>>
    %c0_40 = arith.constant 0 : index
    %c2_41 = arith.constant 2 : index
    %c0_42 = arith.constant 0 : index
    %c0_43 = arith.constant 0 : index
    %44 = vector.load %arg4[%c0_40, %c2_41, %c0_42, %c0_43] : memref<1x4x2x128xf32, #tpu.memory_space<vmem>>, vector<1x1x2x128xf32>
    %45 = vector.shape_cast %44 : vector<1x1x2x128xf32> to vector<2x128xf32>
    %46 = vector.broadcast %43 : f32 to vector<2x128xf32>
    %47 = arith.mulf %46, %45 : vector<2x128xf32>
    %48 = arith.addf %42, %47 : vector<2x128xf32>
    %c1_44 = arith.constant 1 : index
    %c3_45 = arith.constant 3 : index
    %49 = memref.load %arg2[%c1_44, %c3_45] : memref<3x4xf32, #tpu.memory_space<smem>>
    %c0_46 = arith.constant 0 : index
    %c3_47 = arith.constant 3 : index
    %c0_48 = arith.constant 0 : index
    %c0_49 = arith.constant 0 : index
    %50 = vector.load %arg4[%c0_46, %c3_47, %c0_48, %c0_49] : memref<1x4x2x128xf32, #tpu.memory_space<vmem>>, vector<1x1x2x128xf32>
    %51 = vector.shape_cast %50 : vector<1x1x2x128xf32> to vector<2x128xf32>
    %52 = vector.broadcast %49 : f32 to vector<2x128xf32>
    %53 = arith.mulf %52, %51 : vector<2x128xf32>
    %54 = arith.addf %48, %53 : vector<2x128xf32>
    %c0_50 = arith.constant 0 : index
    %c1_51 = arith.constant 1 : index
    %c0_52 = arith.constant 0 : index
    %c0_53 = arith.constant 0 : index
    %55 = vector.load %arg5[%c0_50, %c1_51, %c0_52, %c0_53] : memref<1x3x2x128xf32, #tpu.memory_space<vmem>>, vector<1x1x2x128xf32>
    %56 = vector.shape_cast %55 : vector<1x1x2x128xf32> to vector<2x128xf32>
    %57 = vector.shape_cast %54 : vector<2x128xf32> to vector<1x1x2x128xf32>
    tpu.vector_store %arg5[%c0_50, %c1_51, %c0_52, %c0_53], %57 {strides = array<i32>} : memref<1x3x2x128xf32, #tpu.memory_space<vmem>>, vector<1x1x2x128xf32>,
    %c2_54 = arith.constant 2 : index
    %c0_55 = arith.constant 0 : index
    %58 = memref.load %arg2[%c2_54, %c0_55] : memref<3x4xf32, #tpu.memory_space<smem>>
    %c0_56 = arith.constant 0 : index
    %c0_57 = arith.constant 0 : index
    %c0_58 = arith.constant 0 : index
    %c0_59 = arith.constant 0 : index
    %59 = vector.load %arg4[%c0_56, %c0_57, %c0_58, %c0_59] : memref<1x4x2x128xf32, #tpu.memory_space<vmem>>, vector<1x1x2x128xf32>
    %60 = vector.shape_cast %59 : vector<1x1x2x128xf32> to vector<2x128xf32>
    %61 = vector.broadcast %58 : f32 to vector<2x128xf32>
    %62 = arith.mulf %61, %60 : vector<2x128xf32>
    %c2_60 = arith.constant 2 : index
    %63 = memref.load %arg3[%c2_60] : memref<3xf32, #tpu.memory_space<smem>>
    %64 = vector.broadcast %63 : f32 to vector<2x128xf32>
    %65 = arith.addf %62, %64 : vector<2x128xf32>
    %c2_61 = arith.constant 2 : index
    %c1_62 = arith.constant 1 : index
    %66 = memref.load %arg2[%c2_61, %c1_62] : memref<3x4xf32, #tpu.memory_space<smem>>
    %c0_63 = arith.constant 0 : index
    %c1_64 = arith.constant 1 : index
    %c0_65 = arith.constant 0 : index
    %c0_66 = arith.constant 0 : index
    %67 = vector.load %arg4[%c0_63, %c1_64, %c0_65, %c0_66] : memref<1x4x2x128xf32, #tpu.memory_space<vmem>>, vector<1x1x2x128xf32>
    %68 = vector.shape_cast %67 : vector<1x1x2x128xf32> to vector<2x128xf32>
    %69 = vector.broadcast %66 : f32 to vector<2x128xf32>
    %70 = arith.mulf %69, %68 : vector<2x128xf32>
    %71 = arith.addf %65, %70 : vector<2x128xf32>
    %c2_67 = arith.constant 2 : index
    %c2_68 = arith.constant 2 : index
    %72 = memref.load %arg2[%c2_67, %c2_68] : memref<3x4xf32, #tpu.memory_space<smem>>
    %c0_69 = arith.constant 0 : index
    %c2_70 = arith.constant 2 : index
    %c0_71 = arith.constant 0 : index
    %c0_72 = arith.constant 0 : index
    %73 = vector.load %arg4[%c0_69, %c2_70, %c0_71, %c0_72] : memref<1x4x2x128xf32, #tpu.memory_space<vmem>>, vector<1x1x2x128xf32>
    %74 = vector.shape_cast %73 : vector<1x1x2x128xf32> to vector<2x128xf32>
    %75 = vector.broadcast %72 : f32 to vector<2x128xf32>
    %76 = arith.mulf %75, %74 : vector<2x128xf32>
    %77 = arith.addf %71, %76 : vector<2x128xf32>
    %c2_73 = arith.constant 2 : index
    %c3_74 = arith.constant 3 : index
    %78 = memref.load %arg2[%c2_73, %c3_74] : memref<3x4xf32, #tpu.memory_space<smem>>
    %c0_75 = arith.constant 0 : index
    %c3_76 = arith.constant 3 : index
    %c0_77 = arith.constant 0 : index
    %c0_78 = arith.constant 0 : index
    %79 = vector.load %arg4[%c0_75, %c3_76, %c0_77, %c0_78] : memref<1x4x2x128xf32, #tpu.memory_space<vmem>>, vector<1x1x2x128xf32>
    %80 = vector.shape_cast %79 : vector<1x1x2x128xf32> to vector<2x128xf32>
    %81 = vector.broadcast %78 : f32 to vector<2x128xf32>
    %82 = arith.mulf %81, %80 : vector<2x128xf32>
    %83 = arith.addf %77, %82 : vector<2x128xf32>
    %c0_79 = arith.constant 0 : index
    %c2_80 = arith.constant 2 : index
    %c0_81 = arith.constant 0 : index
    %c0_82 = arith.constant 0 : index
    %84 = vector.load %arg5[%c0_79, %c2_80, %c0_81, %c0_82] : memref<1x3x2x128xf32, #tpu.memory_space<vmem>>, vector<1x1x2x128xf32>
    %85 = vector.shape_cast %84 : vector<1x1x2x128xf32> to vector<2x128xf32>
    %86 = vector.shape_cast %83 : vector<2x128xf32> to vector<1x1x2x128xf32>
    tpu.vector_store %arg5[%c0_79, %c2_80, %c0_81, %c0_82], %86 {strides = array<i32>} : memref<1x3x2x128xf32, #tpu.memory_space<vmem>>, vector<1x1x2x128xf32>,
    return
  }
  func.func @transform_0(%arg0: i32, %arg1: i32) -> (i32, i32) {
    %c0_i32 = arith.constant 0 : i32
    %c0_i32_0 = arith.constant 0 : i32
    %c0_i32_1 = arith.constant 0 : i32
    return %c0_i32, %c0_i32_0 : i32, i32
  }
  func.func @transform_1(%arg0: i32, %arg1: i32) -> i32 {
    %c0_i32 = arith.constant 0 : i32
    %c0_i32_0 = arith.constant 0 : i32
    return %c0_i32 : i32
  }
  func.func @transform_2(%arg0: i32, %arg1: i32) -> (i32, i32, i32, i32) {
    %c0_i32 = arith.constant 0 : i32
    %c0_i32_0 = arith.constant 0 : i32
    %c0_i32_1 = arith.constant 0 : i32
    return %arg0, %c0_i32, %arg1, %c0_i32_0 : i32, i32, i32, i32
  }
  func.func @transform_3(%arg0: i32, %arg1: i32) -> (i32, i32, i32, i32) {
    %c0_i32 = arith.constant 0 : i32
    %c0_i32_0 = arith.constant 0 : i32
    %c0_i32_1 = arith.constant 0 : i32
    return %arg0, %c0_i32, %arg1, %c0_i32_0 : i32, i32, i32, i32
  }
}

</mosaic_0001>

<bundles_post_ra>
// kernel: tpu_custom_call.1
= control target key start
LH: loop header
LB: loop body
LE: loop exit
PB: predicated region body
PF: predicated region fallthrough
CT: control target
= control target key end

     0   :  { %s919_s0 = inlined_call_operand.hbm [shape: f32[3,4], index: 0, kind: input, shape index: {}]   ;;  %s920_s1 = inlined_call_operand.hbm [shape: f32[3], index: 1, kind: input, shape index: {}]   ;;  %s921_s2 = inlined_call_operand.hbm [shape: f32[2,4,2,128], index: 2, kind: input, shape index: {}]   ;;  %s922_s3 = inlined_call_operand.hbm [shape: f32[2,3,2,128], index: 3, kind: output, shape index: {}]  }
   0x1   :  { %923 = sst [smem:[#allocation14_spill]] %s919_s0 }
   0x2   :  { %8 = vsyncpa [#allocation5], 0 }
   0x3   :  { %9 = vsyncpa [#allocation7], 0 }
   0x4   :  { %10 = vsyncpa [#allocation3], 0 }
   0x5   :  { %12 = vsyncpa [#allocation3 + $0x1], 0 }
   0x6   :  { %13 = vsyncpa [#allocation4], 0 }
   0x7   :  { %15 = vsyncpa [#allocation4 + $0x1], 0  ;;  %s741_s12 = smov 0   ;;  %s743_s13 = smov 0  }
   0x8   :  { %s745_s14 = smov 0   ;;  %s747_s15 = smov 0  }
   0x9   :  { %s749_s16 = smov 0   ;;  %s751_s17 = smov 0  }
   0xa LB: > { %s433_s18 = sadd.s32 4294967295, %s713_s17   ;;  %s434_s19 = sadd.s32 4294967294, %s713_s17   ;;  %s713_s17 = sphi %s751_s17, %s21_s17   ;;  %s709_s16 = sphi %s749_s16, %s936_s16   ;;  %s705_s15 = sphi %s747_s15, %s935_s15   ;;  %s701_s14 = sphi %s745_s14, %s934_s14   ;;  %s697_s13 = sphi %s743_s13, %s933_s13   ;;  %s693_s12 = sphi %s741_s12, %s932_s12  }
   0xb   : > { %s84_s20 = sadd.s32 1, %s701_s14  ;;  %p91_p0 = scmp.ne.s32.totalorder %s701_s14, %s697_s13 }
   0xc   : > { %p92_p1 = scmp.eq.s32.totalorder %s713_s17, 0  ;;  %p97_p2 = scmp.ne.s32.totalorder %s697_s13, %s693_s12 }
   0xd   : > { %p779_p3 = scmp.eq.s32.totalorder %s433_s18, 0  ;;  %p123_p4 = scmp.eq.s32.totalorder %s433_s18, 1 }
   0xe   : > { %p783_p5 = por %p92_p1, %p91_p0  ;;  %p129_p6 = scmp.eq.s32.totalorder %s434_s19, 1 }
   0xf   : > { %p789_p7 = por %p779_p3, %p97_p2  ;;  %p793_p8 = por %p123_p4, %p91_p0 }
  0x10   : > { %p797_p9 = por %p129_p6, %p97_p2  ;;  %p435_p10 = scmp.ge.s32.totalorder %s713_s17, 1 }
  0x11   : > { %p136_p11 = scmp.lt.s32.totalorder %s713_s17, 3  ;;  %s929_s0 = sld [smem:[#allocation14_spill]] }
  0x12   : > { %p438_p13 = scmp.ge.s32.totalorder %s713_s17, 2  ;;  %p505_p0 = scmp.lt.s32.totalorder %s713_s17, 2 }
  0x13   : > { %p806_p12 = pnand %p435_p10, %p136_p11  ;;  %s158_s5 = sshll.u32 %s920_s1, 4  ;;  %s159_s5 = int_to_ptr.hbm [resolvable:$true] %s158_s5 }
  0x14   : > { %p819_p2 = pnand %p505_p0, %p783_p5  ;;  %s715_s7 = smov [#allocation2]  }
  0x15   : > { %p488_p1 = pneg %p806_p12  ;;  %s716_s8 = smov [#allocation6]  }
  0x16   : > { %s33_s9 = sadd.s32 1, %s709_s16  ;;  %s169_s10 = sand.u32 1, %s701_s14  }
  0x17   : > { %s148_s28 = sshll.u32 %s929_s0, 4  ;;  %p489_p4 = pnand %p488_p1, %p779_p3  ;;  %s149_s28 = int_to_ptr.hbm [resolvable:$true] %s148_s28 }
  0x18   : > { %p35_p6 = scmp.ge.s32.totalorder %s33_s9, 2  ;;  %s439_s11 = sshll.u32 %s169_s10, 3 }
  0x19   : > { %491 = dma.hbm_to_smem (!%p489_p4), %s149_s28, 64, %s715_s7, [#allocation5]  }
  0x1a   : > { %494 = dma.hbm_to_smem (!%p489_p4), %s159_s5, 16, %s716_s8, [#allocation7]  }
  0x1b   : > { %s473_s18 = sshll.u32 %s709_s16, 3  ;;  %s938_s9 = smov (%p35_p6, %s33_s9), 0 }
  0x1c   : > { %s179_s26 = scalar_lea.hbm %s921_s2, %s473_s18  ;;  %s79_s27 = ssub.s32 %s709_s16, %s938_s9 }
  0x1d   : > { %s180_s30 = sshll.u32 %s179_s26, 4  ;;  %p82_p5 = scmp.eq.s32.totalorder %s79_s27, 0  ;;  %s181_s30 = int_to_ptr.hbm [resolvable:$true] %s180_s30 }
  0x1e   : > { %s173_s28 = scalar_lea.vmem [#allocation8], %s439_s11  ;;  %s170_s7 = scalar_lea.sflag [#allocation3], %s169_s10 }
  0x1f   : > { %s182_s4 = sshll.u32 %s173_s28, 4  ;;  %s717_s8 = smov 32   ;;  %s183_s4 = int_to_ptr.vmem [resolvable:$true] %s182_s4 }
  0x20   : > { %s838_s5 = scalar_select %p82_p5, %s701_s14, %s84_s20  }
  0x21   : > { %s718_s0 = smov 2   ;;  %194 = sbr.rel (%p806_p12) target bundleno = 78 (0x4e), region = 32 }
  0x22   : > { %498 = dma.hbm_to_vmem [thread:$0]  (!%p819_p2), %s181_s30, 128, %s183_s4, %s170_s7, %s717_s8, %s717_s8, %s718_s0  }
  0x26   : > { %676 = dma.done.wait (%p779_p3), [#allocation5], 64  }
  0x27   : > { %678 = vsyncadd (%p779_p3), [#allocation5], 4294967232 }
  0x28   : > { %680 = dma.done.wait (%p779_p3), [#allocation7], 16  }
  0x29   : > { %682 = vsyncadd (%p779_p3), [#allocation7], 4294967280  ;;  %s853_s20 = sand.u32 1, %s697_s13  }
  0x2a   : > { %s445_s0 = sshll.u32 %s853_s20, 3  ;;  %s207_s29 = scalar_lea.sflag [#allocation3], %s853_s20 }
  0x2b   : > { %s857_s6 = scalar_lea.vmem [#allocation8], %s445_s0 }
  0x2c   : > { %684 = dma.done.wait (%p789_p7), %s207_s29, 128  }
  0x2d   : > { %686 = vsyncadd (%p789_p7), %s207_s29, 4294967168 }
  0x2e   : > { %216 = sfence }
  0x2f   : > { %s235_s10 = sld [smem:[#allocation2]]  ;;  %v236_v0 = vld [vmem:[%s857_s6] sm:$0x3]  ;;  %v447_v2 = vld [vmem:[%s857_s6 + $0x2] sm:$0x3]  ;;  %s474_s28 = smul.u32 6, %s853_s20 }
  0x30   : > { %s239_s21 = sld [smem:[#allocation6]]  ;;  %v449_v5 = vld [vmem:[%s857_s6 + $0x4] sm:$0x3]  ;;  %v451_v7 = vld [vmem:[%s857_s6 + $0x6] sm:$0x3] }
  0x31   : > { %s446_s11 = sld [smem:[#allocation2 + $0x1]]  ;;  %v262_v11 = vld [vmem:[%s857_s6] sm:$0x3]  ;;  %v455_v17 = vld [vmem:[%s857_s6 + $0x2] sm:$0x3] }
  0x32   : > { %s448_s18 = sld [smem:[#allocation2 + $0x2]]  ;;  %v457_v20 = vld [vmem:[%s857_s6 + $0x4] sm:$0x3]  ;;  %v459_v23 = vld [vmem:[%s857_s6 + $0x6] sm:$0x3] }
  0x33   : > { %s450_s19 = sld [smem:[#allocation2 + $0x3]]  ;;  %v286_v27 = vld [vmem:[%s857_s6] sm:$0x3]  ;;  %v464_v34 = vld [vmem:[%s857_s6 + $0x2] sm:$0x3] }
  0x34   : > { %s452_s22 = sld [smem:[#allocation2 + $0x80]]  ;;  %v466_v37 = vld [vmem:[%s857_s6 + $0x4] sm:$0x3]  ;;  %v468_v40 = vld [vmem:[%s857_s6 + $0x6] sm:$0x3]  ;;  %s310_s6 = scalar_lea.sflag [#allocation4], %s853_s20 }
  0x35   : > { %v237_v1 = vstv %s235_s10  ;;  %s453_s26 = sld [smem:[#allocation6 + $0x1]]  ;;  %s475_s10 = smul.u32 6, %s705_s15 }
  0x36   : > { %v238_v3 = vmul.f32 %v237_v1, %v236_v0  ;;  %v240_v4 = vstv %s239_s21  ;;  %s454_s23 = sld [smem:[#allocation2 + $0x81]]  ;;  %s234_s21 = scalar_lea.vmem [#allocation9], %s474_s28 }
  0x37   : > { %v245_v6 = vstv %s446_s11  ;;  %s456_s27 = sld [smem:[#allocation2 + $0x82]]  ;;  %s322_s15 = scalar_lea.hbm %s922_s3, %s475_s10 }
  0x38   : > { %v241_v8 = vadd.f32 %v240_v4, %v238_v3  ;;  %v246_v9 = vmul.f32 %v447_v2, %v245_v6  ;;  %v251_v10 = vstv %s448_s18  ;;  %s458_s30 = sld [smem:[#allocation2 + $0x83]]  ;;  %s643_s28 = scalar_lea.hbm %s922_s3, 12 }
  0x39   : > { %v252_v12 = vmul.f32 %v449_v5, %v251_v10  ;;  %v257_v13 = vstv %s450_s19  ;;  %s461_s4 = sld [smem:[#allocation2 + $0x100]]  ;;  %s323_s19 = sshll.u32 %s234_s21, 4  ;;  %s324_s19 = int_to_ptr.vmem [resolvable:$true] %s323_s19 }
  0x3a   : > { %v247_v14 = vadd.f32 %v246_v9, %v241_v8  ;;  %v258_v15 = vmul.f32 %v451_v7, %v257_v13  ;;  %v263_v16 = vstv %s452_s22  ;;  %s870_s7 = sld [smem:[#allocation6 + $0x2]]  ;;  %s325_s22 = sshll.u32 %s322_s15, 4  ;;  %s326_s22 = int_to_ptr.hbm [resolvable:$true] %s325_s22 }
  0x3b   : > { %v264_v18 = vmul.f32 %v263_v16, %v262_v11  ;;  %v266_v19 = vstv %s453_s26  ;;  %s463_s8 = sld [smem:[#allocation2 + $0x101]]  ;;  %s637_s26 = sshra.s32 %s326_s22, 4  ;;  %s638_s26 = int_to_ptr.hbm [resolvable:$true] %s637_s26 }
  0x3c   : > { %v253_v21 = vadd.f32 %v252_v12, %v247_v14  ;;  %v270_v22 = vstv %s454_s23  ;;  %s465_s0 = sld [smem:[#allocation2 + $0x102]]  ;;  %s639_s23 = scalar_lea.hbm %s638_s26, 6 }
  0x3d   : > { %v267_v24 = vadd.f32 %v266_v19, %v264_v18  ;;  %v271_v25 = vmul.f32 %v455_v17, %v270_v22  ;;  %v275_v26 = vstv %s456_s27  ;;  %s467_s29 = sld [smem:[#allocation2 + $0x103]]  ;;  %p640_p3 = scmp.ne.s32.totalorder %s638_s26, %s639_s23 }
  0x3e   : > { %v259_v28 = vadd.f32 %v258_v15, %v253_v21  ;;  %v276_v29 = vmul.f32 %v457_v20, %v275_v26  ;;  %v280_v30 = vstv %s458_s30  ;;  %p644_p11 = scmp.lt.s32.totalorder %s638_s26, %s922_s3  ;;  %p645_p12 = scmp.lt.s32.totalorder %s643_s28, %s639_s23 }
  0x3f   : > { %v272_v31 = vadd.f32 %v271_v25, %v267_v24  ;;  %v281_v32 = vmul.f32 %v459_v23, %v280_v30  ;;  %v287_v33 = vstv %s461_s4  ;;  %p641_p7 = pnand %p640_p3, %p793_p8 }
  0x40   : > { %260 = vst [vmem:[%s234_s21] sm:$0x3] %v259_v28  ;;  %v288_v35 = vmul.f32 %v287_v33, %v286_v27  ;;  %v290_v36 = vstv %s870_s7  ;;  %p646_p0 = por %p645_p12, %p644_p11 }
  0x41   : > { %v277_v38 = vadd.f32 %v276_v29, %v272_v31  ;;  %v294_v39 = vstv %s463_s8  ;;  %p642_p10 = pneg %p641_p7 }
  0x42   : > { %v291_v41 = vadd.f32 %v290_v36, %v288_v35  ;;  %v295_v42 = vmul.f32 %v464_v34, %v294_v39  ;;  %v299_v43 = vstv %s465_s0 }
  0x43   : > { %v282_v44 = vadd.f32 %v281_v32, %v277_v38  ;;  %v300_v45 = vmul.f32 %v466_v37, %v299_v43  ;;  %v304_v46 = vstv %s467_s29  ;;  %p647_p1 = pnand %p646_p0, %p642_p10 }
  0x44   : > { %v296_v47 = vadd.f32 %v295_v42, %v291_v41  ;;  %v305_v48 = vmul.f32 %v468_v40, %v304_v46 }
  0x45   : > { %460 = vst [vmem:[%s234_s21 + $0x2] sm:$0x3] %v282_v44 }
  0x46   : > { %v301_v49 = vadd.f32 %v300_v45, %v296_v47 }
  0x48   : > { %v306_v50 = vadd.f32 %v305_v48, %v301_v49 }
  0x4a   : > { %469 = vst [vmem:[%s234_s21 + $0x4] sm:$0x3] %v306_v50 }
  0x4b   : > { %650 = shalt.err (!%p647_p1)
}
  0x4c   : > { %s719_s20 = smov 32   ;;  %s720_s8 = smov 2  }
  0x4d   : > { %486 = dma.vmem_to_hbm [thread:$0]  (%p793_p8), %s324_s19, 96, %s326_s22, %s310_s6, %s719_s20, %s719_s20, %s720_s8  }
  0x4e PF: > { %s340_s0 = sand.u32 1, %s693_s12   ;;  %p500_p2 = pnand %p438_p13, %p797_p9 }
  0x4f   : > { %s341_s29 = scalar_lea.sflag [#allocation4], %s340_s0 }
  0x50   : > { %p501_p4 = pneg %p500_p2 }
  0x52   : > { %688 = dma.done.wait (%p501_p4), %s341_s29, 96  }
  0x53   : > { %690 = vsyncadd (%p501_p4), %s341_s29, 4294967200  ;;  %s21_s17 = sadd.s32 1, %s713_s17   ;;  %s932_s12 = smov %s697_s13 }
  0x54   : > { %p18_p6 = scmp.ge.s32.totalorder %s21_s17, 4   ;;  %s933_s13 = smov %s701_s14 }
  0x55   : > { %s934_s14 = smov %s838_s5  ;;  %s935_s15 = smov %s709_s16 }
  0x56   : > { %s936_s16 = smov %s938_s9  ;;  %20 = sbr.rel (!%p18_p6) target bundleno = 10 (0xa), region = 91 }
  0x5b   :  { %347 = vsyncpa [#allocation3], 1 }
  0x5c   :  { %349 = vsyncpa [#allocation3 + $0x1], 1 }
  0x5d   :  { %350 = vsyncpa [#allocation4], 1 }
  0x5e   :  { %352 = vsyncpa [#allocation4 + $0x1], 1 }
  0x5f   :  { %353 = vsyncpa [#allocation5], 1 }
  0x60   :  { %355 = vsyncpa [#allocation5 + $0x1], 1 }
  0x61   :  { %356 = vsyncpa [#allocation7], 1 }

</bundles_post_ra>
